<compile_context>
chip_gen: v7x
topology: tpu7x:2x2x1
jax: 0.10.0
libtpu: 0.0.40
codegen_flags: <defaults>
</compile_context>

<pallas_src>
import jax
import jax.numpy as jnp
from jax.experimental import pallas as pl
from jax.experimental.pallas import tpu as pltpu


HIDDEN = 128
_MIN_STEP_ROWS = 1024   # don't shrink tiles below this when enforcing >= 4 grid steps


def _round_up(n, m):
    return (n + m - 1) // m * m


def _mlp_kernel(x_ref, w1_ref, b1_ref, w2_ref, b2_ref, w3_ref, b3_ref, o_ref):
    """Fused 3-layer MLP on one (tb, in_dim) batch tile.

    Matmul operands are bf16 (cast in-kernel); accumulation, bias adds, ReLU and the
    final 33-wide store are f32.
    """
    # fc1 + ReLU (x cast to bf16 here, not in a separate wrapper pass over HBM)
    h = jnp.dot(x_ref[...].astype(jnp.bfloat16), w1_ref[...],
                preferred_element_type=jnp.float32)
    h = jnp.maximum(h + b1_ref[...], 0.0)
    # fc2 + ReLU
    h = jnp.dot(h.astype(jnp.bfloat16), w2_ref[...],
                preferred_element_type=jnp.float32)
    h = jnp.maximum(h + b2_ref[...], 0.0)
    # fc3 -- true 33-wide output (masked vst is cheap; write is 132 B/row, not 512)
    o = jnp.dot(h.astype(jnp.bfloat16), w3_ref[...],
                preferred_element_type=jnp.float32)
    o_ref[...] = (o + b3_ref[...]).astype(o_ref.dtype)


def trajectory_generator_forward(x, params, *, block_b=4096):
    """x: (B, input_dim) float32. Returns (B, 11, 3), matching torch's x.view(-1, 11, 3)."""
    w1, b1, w2, b2, w3, b3 = params
    B, in_dim = x.shape
    out_dim = w3.shape[1]
    assert out_dim == 33, "output_dim must be 33 to reshape to (-1, 11, 3)"

    # Batch tile: as large as practical (amortizes per-step pipeline overhead), but keep
    # >= 4 grid steps once the batch is big enough so both v7x TensorCores get work and
    # each still overlaps DMA with compute.  Align to the 8-row f32 sublane quantum when
    # there is more than one block; a single block equal to the full batch is always legal.
    tb = min(block_b, B)
    if B >= 4 * _MIN_STEP_ROWS:
        tb = min(tb, max(_MIN_STEP_ROWS, pl.cdiv(B, 4)))
    if tb < B:
        tb = _round_up(tb, 8)
    else:
        tb = B
    grid = (pl.cdiv(B, tb),)

    # bf16 weights for the MXU (tiny, one-time pass); biases stay f32 for the VPU epilogue.
    w1_bf = w1.astype(jnp.bfloat16)
    w2_bf = w2.astype(jnp.bfloat16)
    w3_bf = w3.astype(jnp.bfloat16)
    b1f = b1.astype(jnp.float32)
    b2f = b2.astype(jnp.float32)
    b3f = b3.astype(jnp.float32)

    const = lambda shape: pl.BlockSpec(shape, lambda i: (0, 0))

    flops = 2 * B * (in_dim * HIDDEN + HIDDEN * HIDDEN + HIDDEN * out_dim)
    bytes_accessed = (
        x.size * 4 + B * out_dim * 4
        + (w1_bf.size + w2_bf.size + w3_bf.size) * 2
        + (b1f.size + b2f.size + b3f.size) * 4
    )

    y = pl.pallas_call(
        _mlp_kernel,
        out_shape=jax.ShapeDtypeStruct((B, out_dim), jnp.float32),
        grid=grid,
        in_specs=[
            pl.BlockSpec((tb, in_dim), lambda i: (i, 0)),   # batch-tiled input (f32)
            const(w1_bf.shape), const(b1f.shape),           # weights: constant index_map
            const(w2_bf.shape), const(b2f.shape),           #   -> no re-DMA across grid
            const(w3_bf.shape), const(b3f.shape),
        ],
        out_specs=pl.BlockSpec((tb, out_dim), lambda i: (i, 0)),  # true 33-wide output
        compiler_params=pltpu.CompilerParams(
            dimension_semantics=("parallel",)),             # shard batch across TCs (v7x)
        cost_estimate=pl.CostEstimate(
            flops=flops, transcendentals=0, bytes_accessed=bytes_accessed),
    )(x, w1_bf, b1f, w2_bf, b2f, w3_bf, b3f)

    # torch's x.view(-1, 11, 3): contiguous reshape only, no slicing passes.
    return y.reshape(-1, 11, 3)


def init_params(key, input_dim, output_dim):
    """Deterministic synthetic params matching nn.Linear shapes.

    PyTorch nn.Linear stores weight as (out, in); we keep the transposed (in, out)
    layout for the kernel. Biases are kept 2D (1, out) for TPU-friendly broadcasting.
    """
    k1, k2, k3, k4, k5, k6 = jax.random.split(key, 6)
    scale1 = 1.0 / jnp.sqrt(input_dim)
    scale2 = 1.0 / jnp.sqrt(128.0)
    w1 = jax.random.uniform(k1, (input_dim, 128), jnp.float32, -scale1, scale1)
    b1 = jax.random.uniform(k2, (1, 128), jnp.float32, -scale1, scale1)
    w2 = jax.random.uniform(k3, (128, 128), jnp.float32, -scale2, scale2)
    b2 = jax.random.uniform(k4, (1, 128), jnp.float32, -scale2, scale2)
    w3 = jax.random.uniform(k5, (128, output_dim), jnp.float32, -scale2, scale2)
    b3 = jax.random.uniform(k6, (1, output_dim), jnp.float32, -scale2, scale2)
    return (w1, b1, w2, b2, w3, b3)


def _reference(x, params):
    w1, b1, w2, b2, w3, b3 = params
    h = jnp.maximum(x @ w1 + b1, 0.0)
    h = jnp.maximum(h @ w2 + b2, 0.0)
    return (h @ w3 + b3).reshape(-1, 11, 3)


if __name__ == "__main__":
    key = jax.random.PRNGKey(0)
    input_dim = 16
    output_dim = 33   # 11 * 3, required by view(-1, 11, 3)
    batch = 8

    pkey, xkey, xkey2 = jax.random.split(key, 3)
    params = init_params(pkey, input_dim, output_dim)

    # small-batch check (single full-batch block)
    x = jax.random.normal(xkey, (batch, input_dim), jnp.float32)
    out = jax.block_until_ready(trajectory_generator_forward(x, params))
    ref = _reference(x, params)
    assert out.shape == (batch, 11, 3)
    # bf16 matmul operands -> relaxed tolerance vs. the f32 reference
    assert jnp.allclose(out, ref, atol=5e-2, rtol=5e-2)

    # multi-tile check: B not a multiple of the block, grid > 1, ragged last block
    x2 = jax.random.normal(xkey2, (300, input_dim), jnp.float32)
    out2 = jax.block_until_ready(
        trajectory_generator_forward(x2, params, block_b=128))
    ref2 = _reference(x2, params)
    assert out2.shape == (300, 11, 3)
    assert jnp.allclose(out2, ref2, atol=5e-2, rtol=5e-2)

    print("KERNEL_OK")
</pallas_src>

<mosaic_0001>
module attributes {stable_mosaic.version = 11 : i64} {
  func.func @_mlp_kernel(%arg0: i32, %arg1: memref<8x16xf32, #tpu.memory_space<vmem>>, %arg2: memref<16x128xbf16, #tpu.memory_space<vmem>>, %arg3: memref<1x128xf32, #tpu.memory_space<vmem>>, %arg4: memref<128x128xbf16, #tpu.memory_space<vmem>>, %arg5: memref<1x128xf32, #tpu.memory_space<vmem>>, %arg6: memref<128x33xbf16, #tpu.memory_space<vmem>>, %arg7: memref<1x33xf32, #tpu.memory_space<vmem>>, %arg8: memref<8x33xf32, #tpu.memory_space<vmem>>) attributes {dimension_semantics = [#tpu.dimension_semantics<parallel>], iteration_bounds = array<i64: 1>, scalar_prefetch = 0 : i64, scratch_operands = 0 : i64, tpu.core_type = #tpu.core_type<tc>, window_params = [{transform_indices = @transform_0, window_bounds = array<i64: 8, 16>}, {pipeline_mode = #tpu.pipeline_mode<synchronous>, transform_indices = @transform_1, window_bounds = array<i64: 16, 128>}, {pipeline_mode = #tpu.pipeline_mode<synchronous>, transform_indices = @transform_2, window_bounds = array<i64: 1, 128>}, {pipeline_mode = #tpu.pipeline_mode<synchronous>, transform_indices = @transform_3, window_bounds = array<i64: 128, 128>}, {pipeline_mode = #tpu.pipeline_mode<synchronous>, transform_indices = @transform_4, window_bounds = array<i64: 1, 128>}, {pipeline_mode = #tpu.pipeline_mode<synchronous>, transform_indices = @transform_5, window_bounds = array<i64: 128, 33>}, {pipeline_mode = #tpu.pipeline_mode<synchronous>, transform_indices = @transform_6, window_bounds = array<i64: 1, 33>}, {transform_indices = @transform_7, window_bounds = array<i64: 8, 33>}]} {
    %c0 = arith.constant 0 : index
    %c0_0 = arith.constant 0 : index
    %0 = vector.load %arg1[%c0, %c0_0] : memref<8x16xf32, #tpu.memory_space<vmem>>, vector<8x16xf32>
    %1 = arith.truncf %0 : vector<8x16xf32> to vector<8x16xbf16>
    %c0_1 = arith.constant 0 : index
    %c0_2 = arith.constant 0 : index
    %2 = vector.load %arg2[%c0_1, %c0_2] : memref<16x128xbf16, #tpu.memory_space<vmem>>, vector<16x128xbf16>
    %cst = arith.constant dense<0.000000e+00> : vector<8x128xf32>
    %3 = tpu.matmul %1, %2, %cst {dimension_numbers = #tpu.dot_dimension_numbers<[1], [0], [0], [1], [0, 0, 1, 1], [], []>} : vector<8x16xbf16>, vector<16x128xbf16>, vector<8x128xf32> -> vector<8x128xf32>
    %c0_3 = arith.constant 0 : index
    %c0_4 = arith.constant 0 : index
    %4 = vector.load %arg3[%c0_3, %c0_4] : memref<1x128xf32, #tpu.memory_space<vmem>>, vector<1x128xf32>
    %5 = vector.broadcast %4 : vector<1x128xf32> to vector<8x128xf32>
    %6 = arith.addf %3, %5 : vector<8x128xf32>
    %cst_5 = arith.constant 0.000000e+00 : f32
    %7 = vector.broadcast %cst_5 : f32 to vector<8x128xf32>
    %8 = arith.maximumf %6, %7 : vector<8x128xf32>
    %9 = arith.truncf %8 : vector<8x128xf32> to vector<8x128xbf16>
    %c0_6 = arith.constant 0 : index
    %c0_7 = arith.constant 0 : index
    %10 = vector.load %arg4[%c0_6, %c0_7] : memref<128x128xbf16, #tpu.memory_space<vmem>>, vector<128x128xbf16>
    %cst_8 = arith.constant dense<0.000000e+00> : vector<8x128xf32>
    %11 = tpu.matmul %9, %10, %cst_8 {dimension_numbers = #tpu.dot_dimension_numbers<[1], [0], [0], [1], [0, 0, 1, 1], [], []>} : vector<8x128xbf16>, vector<128x128xbf16>, vector<8x128xf32> -> vector<8x128xf32>
    %c0_9 = arith.constant 0 : index
    %c0_10 = arith.constant 0 : index
    %12 = vector.load %arg5[%c0_9, %c0_10] : memref<1x128xf32, #tpu.memory_space<vmem>>, vector<1x128xf32>
    %13 = vector.broadcast %12 : vector<1x128xf32> to vector<8x128xf32>
    %14 = arith.addf %11, %13 : vector<8x128xf32>
    %cst_11 = arith.constant 0.000000e+00 : f32
    %15 = vector.broadcast %cst_11 : f32 to vector<8x128xf32>
    %16 = arith.maximumf %14, %15 : vector<8x128xf32>
    %17 = arith.truncf %16 : vector<8x128xf32> to vector<8x128xbf16>
    %c0_12 = arith.constant 0 : index
    %c0_13 = arith.constant 0 : index
    %18 = vector.load %arg6[%c0_12, %c0_13] : memref<128x33xbf16, #tpu.memory_space<vmem>>, vector<128x33xbf16>
    %cst_14 = arith.constant dense<0.000000e+00> : vector<8x33xf32>
    %19 = tpu.matmul %17, %18, %cst_14 {dimension_numbers = #tpu.dot_dimension_numbers<[1], [0], [0], [1], [0, 0, 1, 1], [], []>} : vector<8x128xbf16>, vector<128x33xbf16>, vector<8x33xf32> -> vector<8x33xf32>
    %c0_15 = arith.constant 0 : index
    %c0_16 = arith.constant 0 : index
    %20 = vector.load %arg7[%c0_15, %c0_16] : memref<1x33xf32, #tpu.memory_space<vmem>>, vector<1x33xf32>
    %21 = vector.broadcast %20 : vector<1x33xf32> to vector<8x33xf32>
    %22 = arith.addf %19, %21 : vector<8x33xf32>
    %c0_17 = arith.constant 0 : index
    %c0_18 = arith.constant 0 : index
    %23 = vector.load %arg8[%c0_17, %c0_18] : memref<8x33xf32, #tpu.memory_space<vmem>>, vector<8x33xf32>
    tpu.vector_store %arg8[%c0_17, %c0_18], %22 {strides = array<i32>} : memref<8x33xf32, #tpu.memory_space<vmem>>, vector<8x33xf32>,
    return
  }
  func.func @transform_0(%arg0: i32) -> (i32, i32) {
    %c0_i32 = arith.constant 0 : i32
    %c0_i32_0 = arith.constant 0 : i32
    return %arg0, %c0_i32 : i32, i32
  }
  func.func @transform_1(%arg0: i32) -> (i32, i32) {
    %c0_i32 = arith.constant 0 : i32
    %c0_i32_0 = arith.constant 0 : i32
    %c0_i32_1 = arith.constant 0 : i32
    return %c0_i32, %c0_i32_0 : i32, i32
  }
  func.func @transform_2(%arg0: i32) -> (i32, i32) {
    %c0_i32 = arith.constant 0 : i32
    %c0_i32_0 = arith.constant 0 : i32
    %c0_i32_1 = arith.constant 0 : i32
    return %c0_i32, %c0_i32_0 : i32, i32
  }
  func.func @transform_3(%arg0: i32) -> (i32, i32) {
    %c0_i32 = arith.constant 0 : i32
    %c0_i32_0 = arith.constant 0 : i32
    %c0_i32_1 = arith.constant 0 : i32
    return %c0_i32, %c0_i32_0 : i32, i32
  }
  func.func @transform_4(%arg0: i32) -> (i32, i32) {
    %c0_i32 = arith.constant 0 : i32
    %c0_i32_0 = arith.constant 0 : i32
    %c0_i32_1 = arith.constant 0 : i32
    return %c0_i32, %c0_i32_0 : i32, i32
  }
  func.func @transform_5(%arg0: i32) -> (i32, i32) {
    %c0_i32 = arith.constant 0 : i32
    %c0_i32_0 = arith.constant 0 : i32
    %c0_i32_1 = arith.constant 0 : i32
    return %c0_i32, %c0_i32_0 : i32, i32
  }
  func.func @transform_6(%arg0: i32) -> (i32, i32) {
    %c0_i32 = arith.constant 0 : i32
    %c0_i32_0 = arith.constant 0 : i32
    %c0_i32_1 = arith.constant 0 : i32
    return %c0_i32, %c0_i32_0 : i32, i32
  }
  func.func @transform_7(%arg0: i32) -> (i32, i32) {
    %c0_i32 = arith.constant 0 : i32
    %c0_i32_0 = arith.constant 0 : i32
    return %arg0, %c0_i32 : i32, i32
  }
}

</mosaic_0001>

<bundles_post_ra>
// kernel: tpu_custom_call.1
= control target key start
LH: loop header
LB: loop body
LE: loop exit
PB: predicated region body
PF: predicated region fallthrough
CT: control target
= control target key end

     0   :  { %v462_v1 = vmov 0.0   ;;  %vm45_vm0 = vcmask 130048   ;;  %vm463_vm1 = vmmov 0   ;;  %s600_s0 = inlined_call_operand.vmem [shape: f32[8,16], index: 0, kind: input, shape index: {}]   ;;  %s601_s1 = inlined_call_operand.vmem [shape: bf16[16,128], index: 1, kind: input, shape index: {}]   ;;  %s602_s2 = inlined_call_operand.vmem [shape: f32[1,128], index: 2, kind: input, shape index: {}]   ;;  %s603_s3 = inlined_call_operand.vmem [shape: bf16[128,128], index: 3, kind: input, shape index: {}]   ;;  %s604_s4 = inlined_call_operand.vmem [shape: f32[1,128], index: 4, kind: input, shape index: {}]   ;;  %s605_s5 = inlined_call_operand.vmem [shape: bf16[128,33], index: 5, kind: input, shape index: {}]   ;;  %s606_s6 = inlined_call_operand.vmem [shape: f32[1,33], index: 6, kind: input, shape index: {}]   ;;  %s607_s7 = inlined_call_operand.hbm [shape: f32[8,33], index: 7, kind: output, shape index: {}]  }
   0x1   :  { %v421_v0 = vld [vmem:[%s601_s1] sm:$0xff]   ;;  %372 = vmatprep.subr.bf16.mxu0 %v462_v1  ;;  %378 = vmatprep.subr.bf16.mxu1 %v462_v1  ;;  %v423_v5 = vld [vmem:[%s603_s3 + $0x8] sm:$0xff]   ;;  %v424_v6 = vld [vmem:[%s603_s3 + $0x10] sm:$0xff]  }
   0x2   :  { %v28_v2 = vld [vmem:[%s600_s0] sm:$0xff]  ;;  %373 = vmatpush3.bf16.msra.mxu0 %v421_v0  ;;  %374 = vmatprep.mubr.msk.bf16.mxu0 %vm463_vm1, %v462_v1  ;;  %v425_v7 = vld [vmem:[%s603_s3 + $0x18] sm:$0xff]  }
   0x3   :  { %v422_v3 = vld [vmem:[%s603_s3] sm:$0xff]   ;;  %v29_v4 = vpack.c.bf16 %v28_v2, %v28_v2  ;;  %394 = vmatprep.mubr.msk.bf16.mxu1 %vm463_vm1, %v462_v1  ;;  %398 = vmatprep.subr.bf16.mxu0 %v462_v1 }
   0x4   :  { %379 = vmatpush3.bf16.msra.mxu1 %v422_v3 }
   0x5   :  { %380 = vmatprep.subr.bf16.mxu1 %v462_v1  ;;  %375 = vmatmul.mubr.msk.bf16.vlgmr.msra.gmra.mrb[0].mxu0 %vm45_vm0, %v29_v4 }
   0x6   :  { %414 = vmatprep.mubr.msk.bf16.mxu0 %vm463_vm1, %v462_v1 }
   0x8   :  { %381 = vmatpush3.bf16.msra.mxu1 %v423_v5 }
   0x9   :  { %382 = vmatprep.subr.bf16.mxu1 %v462_v1 }
   0xc   :  { %383 = vmatpush3.bf16.msra.mxu1 %v424_v6 }
   0xd   :  { %384 = vmatprep.subr.bf16.mxu1 %v462_v1 }
   0xe   :  { %12 = vsyncpa [#allocation3], 0  ;;  %v426_v8 = vld [vmem:[%s603_s3 + $0x20] sm:$0xff]   ;;  %v427_v9 = vld [vmem:[%s603_s3 + $0x28] sm:$0xff]   ;;  %s464_s14 = smov [#allocation2]   ;;  %vm315_vm2 = vcmask 269312  }
   0xf   :  { %v428_v10 = vld [vmem:[%s603_s3 + $0x30] sm:$0xff]   ;;  %v429_v11 = vld [vmem:[%s603_s3 + $0x38] sm:$0xff]   ;;  %v430_v12 = vld [vmem:[%s605_s5] sm:$0xff]   ;;  %s323_s15 = sshll.u32 %s464_s14, 4  ;;  %s324_s15 = int_to_ptr.vmem [resolvable:$true] %s323_s15 }
  0x10   :  { %385 = vmatpush3.bf16.msra.mxu1 %v425_v7  ;;  %399 = vmatpush3.bf16.msra.mxu0 %v430_v12  ;;  %v431_v13 = vld [vmem:[%s605_s5 + $0x8] sm:$0xff]   ;;  %v432_v14 = vld [vmem:[%s605_s5 + $0x10] sm:$0xff]   ;;  %v433_v15 = vld [vmem:[%s605_s5 + $0x18] sm:$0xff]   ;;  %p443_p1 = scmp.lt.s32.totalorder %s324_s15, %s324_s15 }
  0x11   :  { %386 = vmatprep.subr.bf16.mxu1 %v462_v1  ;;  %400 = vmatprep.subr.bf16.mxu0 %v462_v1  ;;  %v434_v16 = vld [vmem:[%s605_s5 + $0x20] sm:$0xff]   ;;  %v435_v17 = vld [vmem:[%s605_s5 + $0x28] sm:$0xff]   ;;  %v436_v26 = vld [vmem:[%s605_s5 + $0x30] sm:$0xff]  }
  0x12   :  { %v331_v18 = vld [vmem:[%s602_s2] ss:$0 sm:$0xff]  ;;  %v437_v27 = vld [vmem:[%s605_s5 + $0x38] sm:$0xff]  }
  0x13   :  { %v334_v28 = vld [vmem:[%s604_s4] ss:$0 sm:$0xff]  ;;  %s438_s4 = scalar_lea.vmem %s324_s15, 128 }
  0x14   :  { %387 = vmatpush3.bf16.msra.mxu1 %v426_v8  ;;  %401 = vmatpush3.bf16.msra.mxu0 %v431_v13  ;;  %v343_v36 = vld [vmem:[%s606_s6] ss:$0 sm:$0xff]  ;;  %p439_p0 = scmp.ne.s32.totalorder %s324_s15, %s438_s4  ;;  %p444_p2 = scmp.lt.s32.totalorder %s438_s4, %s438_s4 }
  0x15   :  { %388 = vmatprep.subr.bf16.mxu1 %v462_v1  ;;  %402 = vmatprep.subr.bf16.mxu0 %v462_v1 }
  0x16   :  { %p445_p3 = por %p444_p2, %p443_p1 }
  0x18   :  { %389 = vmatpush3.bf16.msra.mxu1 %v427_v9  ;;  %403 = vmatpush3.bf16.msra.mxu0 %v432_v14  ;;  %p446_p4 = pnand %p445_p3, %p439_p0 }
  0x19   :  { %390 = vmatprep.subr.bf16.mxu1 %v462_v1  ;;  %404 = vmatprep.subr.bf16.mxu0 %v462_v1 }
  0x1c   :  { %391 = vmatpush3.bf16.msra.mxu1 %v428_v10  ;;  %405 = vmatpush3.bf16.msra.mxu0 %v433_v15 }
  0x1d   :  { %392 = vmatprep.subr.bf16.mxu1 %v462_v1  ;;  %406 = vmatprep.subr.bf16.mxu0 %v462_v1 }
  0x20   :  { %393 = vmatpush3.bf16.msra.mxu1 %v429_v11  ;;  %407 = vmatpush3.bf16.msra.mxu0 %v434_v16 }
  0x21   :  { %408 = vmatprep.subr.bf16.mxu0 %v462_v1 }
  0x24   :  { %409 = vmatpush3.bf16.msra.mxu0 %v435_v17 }
  0x25   :  { %410 = vmatprep.subr.bf16.mxu0 %v462_v1 }
  0x28   :  { %411 = vmatpush3.bf16.msra.mxu0 %v436_v26 }
  0x29   :  { %412 = vmatprep.subr.bf16.mxu0 %v462_v1 }
  0x2c   :  { %413 = vmatpush3.bf16.msra.mxu0 %v437_v27 }
  0xd8   :  { %v83_v19 = vpop.f32.mrb[0].mxu0 }
  0xd9   :  { %v84_v20 = vadd.f32 %v331_v18, %v83_v19  ;;  %v376_v21 = vpop.f32.mrb[1].mxu0 }
  0xda   :  { %v86_v22 = vpop.f32.mrb[2].mxu0 }
  0xdb   :  { %v89_v23 = vmax.f32 %v84_v20, 0.0  ;;  %v377_v24 = vpop.f32.mrb[3].mxu0 }
  0xdd   :  { %v90_v25 = vpack.c.bf16 %v89_v23, %v89_v23 }
  0xdf   :  { %395 = vmatmul.mubr.bf16.vlgmr.msra.gmra.mrb[0].mxu1 %v90_v25 }
 0x1b2   :  { %v196_v29 = vpop.f32.mrb[0].mxu1 }
 0x1b3   :  { %v197_v30 = vadd.f32 %v334_v28, %v196_v29  ;;  %v396_v31 = vpop.f32.mrb[1].mxu1 }
 0x1b4   :  { %v199_v32 = vpop.f32.mrb[2].mxu1 }
 0x1b5   :  { %v202_v33 = vmax.f32 %v197_v30, 0.0  ;;  %v397_v34 = vpop.f32.mrb[3].mxu1 }
 0x1b7   :  { %v203_v35 = vpack.c.bf16 %v202_v33, %v202_v33 }
 0x1b9   :  { %415 = vmatmul.mubr.bf16.vlgmr.msra.gmra.mrb[4].mxu0 %v203_v35 }
 0x28c   :  { %v309_v37 = vpop.f32.mrb[4].mxu0 }
 0x28d   :  { %v310_v38 = vadd.f32 %v343_v36, %v309_v37  ;;  %v416_v39 = vpop.f32.mrb[5].mxu0 }
 0x28e   :  { %v312_v40 = vpop.f32.mrb[6].mxu0 }
 0x28f   :  { %v417_v41 = vpop.f32.mrb[7].mxu0  ;;  %316 = vst.msk [vmem:[#allocation2] sm:$0xff] %vm315_vm2, %v310_v38 }
 0x290   :  { %449 = shalt.err (!%p446_p4)
}
 0x291   :  { %s450_s6 = scalar_lea.hbm %s607_s7, 128 }
 0x292   :  { %p451_p5 = scmp.ne.s32.totalorder %s607_s7, %s450_s6  ;;  %p454_p6 = scmp.lt.u32.totalorder %s450_s6, %s607_s7 }
 0x294   :  { %p456_p7 = pnand %p454_p6, %p451_p5 }
 0x296   :  { %459 = shalt.err (!%p456_p7)
}
 0x297   :  { %326 = dma.vmem_to_hbm [thread:$0]  %s324_s15, 128, %s607_s7, [#allocation3]  }
 0x298   :  { %460 = dma.done.wait [#allocation3], 128  }
 0x299   :  { %461 = vsyncadd [#allocation3], 4294967168 }
 0x29a   :  { %330 = vsyncpa [#allocation3], 1 }

</bundles_post_ra>
